<compile_context>
chip_gen: v6e
topology: v6e:2x2x1
jax: 0.10.0
libtpu: 0.0.40
codegen_flags: <defaults>
</compile_context>

<pallas_src>
import jax
import jax.numpy as jnp
from jax.experimental import pallas as pl
from jax.experimental.pallas import tpu as pltpu


def _hd_kernel(pred_ref, gtt_ref, out_ref,
               row_min_ref, col_min_ref, dxy_ref, dyx_ref):
    ni = pl.program_id(1)
    mi = pl.program_id(2)
    last_ni = pl.num_programs(1) - 1
    last_mi = pl.num_programs(2) - 1

    x = pred_ref[0]     # (tn, D)  points of this n-tile, n on sublanes
    yt = gtt_ref[0]     # (D, tm)  transposed gt tile, m on lanes
    tn, dim = x.shape
    tm = yt.shape[1]

    # ---- squared pairwise distances for this (tn, tm) tile --------------------
    # Direct differences (exact, no cancellation, no sqrt in the hot loop).
    dk = x[:, 0:1] - yt[0:1, :]                    # (tn, 1) - (1, tm) -> (tn, tm)
    d2 = dk * dk
    for k in range(1, dim):
        dk = x[:, k:k + 1] - yt[k:k + 1, :]
        d2 = d2 + dk * dk

    # ---- directed term X -> Y : running row-min over m (lane-folded) ----------
    @pl.when(mi == 0)
    def _():
        row_min_ref[...] = jnp.full_like(row_min_ref, jnp.inf)

    rm = row_min_ref[...]                           # (tn, 128)
    for c in range(tm // 128):                      # elementwise VPU minima only
        rm = jnp.minimum(rm, d2[:, c * 128:(c + 1) * 128])
    row_min_ref[...] = rm

    @pl.when(mi == last_mi)
    def _():
        # Row-min complete for this n-tile: one cross-lane min + max over rows,
        # folded into the per-batch running max (still squared distances).
        tile_dxy = jnp.max(jnp.min(rm, axis=1, keepdims=True),
                           axis=0, keepdims=True)                   # (1, 1)
        prev = jnp.where(ni == 0, jnp.full_like(tile_dxy, -jnp.inf), dxy_ref[...])
        dxy_ref[...] = jnp.maximum(prev, tile_dxy)

    # ---- directed term Y -> X : running column-min over n (sublane-folded) ----
    cm = d2[0:8, :]                                 # (8, tm)
    for r in range(1, tn // 8):                     # elementwise VPU minima only
        cm = jnp.minimum(cm, d2[r * 8:(r + 1) * 8, :])

    @pl.when(ni == 0)
    def _():
        col_min_ref[mi] = cm

    @pl.when(ni != 0)
    def _():
        col_min_ref[mi] = jnp.minimum(col_min_ref[mi], cm)

    @pl.when(ni == last_ni)
    def _():
        # Column-min complete for this m-tile: fold sublanes, max over lanes,
        # folded into the per-batch running max.
        per_m = jnp.min(col_min_ref[mi], axis=0, keepdims=True)      # (1, tm)
        chunk_dyx = jnp.max(per_m, axis=1, keepdims=True)            # (1, 1)
        prev = jnp.where(mi == 0, jnp.full_like(chunk_dyx, -jnp.inf), dyx_ref[...])
        dyx_ref[...] = jnp.maximum(prev, chunk_dyx)

    # ---- finalize: clamp + sqrt applied once, lane-dense output write ---------
    @pl.when((ni == last_ni) & (mi == last_mi))
    def _():
        hd2 = jnp.maximum(jnp.maximum(dxy_ref[...], dyx_ref[...]), 0.0)   # (1, 1)
        out_ref[0] = jnp.broadcast_to(jnp.sqrt(hd2), (1, 128)).astype(out_ref.dtype)


def _round_up(a, b):
    return (a + b - 1) // b * b


def hd_loss(prediction: jax.Array, ground_truth: jax.Array,
            *, tn_max: int = 512, tm_max: int = 512) -> jax.Array:
    """Pallas implementation of HDLoss.forward (symmetric Hausdorff distance)."""
    assert tn_max % 8 == 0 and tm_max % 128 == 0
    squeeze_batch = False
    if prediction.ndim == 2:             # torch.cdist also accepts unbatched inputs
        prediction = prediction[None]
        ground_truth = ground_truth[None]
        squeeze_batch = True

    B, N, D = prediction.shape
    B2, M, D2 = ground_truth.shape
    assert B == B2 and D == D2, "batch / coordinate dims must match"

    pred = prediction.astype(jnp.float32)
    gt = ground_truth.astype(jnp.float32)

    tn = min(_round_up(N, 8), tn_max)        # multiple of 8 (sublanes)
    tm = min(_round_up(M, 128), tm_max)      # multiple of 128 (lanes)
    n_pad = _round_up(N, tn)
    m_pad = _round_up(M, tm)
    nt = n_pad // tn
    mt = m_pad // tm

    # Edge padding replicates real points; duplicates do not change the
    # Hausdorff distance, so the padded problem is exactly equivalent.
    if n_pad != N:
        pred = jnp.pad(pred, ((0, 0), (0, n_pad - N), (0, 0)), mode="edge")
    if m_pad != M:
        gt = jnp.pad(gt, ((0, 0), (0, m_pad - M), (0, 0)), mode="edge")

    gt_t = jnp.transpose(gt, (0, 2, 1))      # (B, D, m_pad): M on lanes

    out = pl.pallas_call(
        _hd_kernel,
        out_shape=jax.ShapeDtypeStruct((B, 1, 128), jnp.float32),
        grid=(B, nt, mt),
        in_specs=[
            pl.BlockSpec((1, tn, D), lambda b, ni, mi: (b, ni, 0)),
            pl.BlockSpec((1, D, tm), lambda b, ni, mi: (b, 0, mi)),
        ],
        out_specs=pl.BlockSpec((1, 1, 128), lambda b, ni, mi: (b, 0, 0)),
        scratch_shapes=[
            pltpu.VMEM((tn, 128), jnp.float32),     # lane-folded row min   (X->Y)
            pltpu.VMEM((mt, 8, tm), jnp.float32),   # sublane-folded col min (Y->X)
            pltpu.VMEM((1, 1), jnp.float32),        # running max_n min_m d^2
            pltpu.VMEM((1, 1), jnp.float32),        # running max_m min_n d^2
        ],
        compiler_params=pltpu.CompilerParams(
            dimension_semantics=("parallel", "arbitrary", "arbitrary"),
            vmem_limit_bytes=32 * 1024 * 1024,
        ),
    )(pred, gt_t)

    result = out[:, 0, 0]
    if squeeze_batch:
        result = result[0]
    return result


def hd_loss_ref(prediction: jax.Array, ground_truth: jax.Array) -> jax.Array:
    """Pure-JAX reference matching the PyTorch semantics exactly."""
    p = prediction.astype(jnp.float32)
    g = ground_truth.astype(jnp.float32)
    diff = p[:, :, None, :] - g[:, None, :, :]
    d = jnp.sqrt(jnp.sum(diff * diff, axis=-1))            # (B, N, M)
    d_xy = jnp.max(jnp.min(d, axis=2), axis=1)             # (B,)
    d_yx = jnp.max(jnp.min(d, axis=1), axis=1)             # (B,)
    return jnp.maximum(d_xy, d_yx)


if __name__ == "__main__":
    key = jax.random.PRNGKey(0)
    k1, k2, k3, k4 = jax.random.split(key, 4)

    # Small-cloud case (single tile per batch): B=2, N=64, M=48, D=3.
    prediction = jax.random.normal(k1, (2, 64, 3), dtype=jnp.float32)
    ground_truth = jax.random.normal(k2, (2, 48, 3), dtype=jnp.float32) + 0.5
    out = jax.block_until_ready(hd_loss(prediction, ground_truth))
    ref = jax.block_until_ready(hd_loss_ref(prediction, ground_truth))
    assert out.shape == (2,)
    assert jnp.allclose(out, ref, atol=1e-4, rtol=1e-4), (out, ref)

    # Multi-tile case (exercises N/M tiling, edge padding, running-min accumulators).
    pred2 = jax.random.normal(k3, (2, 100, 3), dtype=jnp.float32)
    gt2 = jax.random.normal(k4, (2, 200, 3), dtype=jnp.float32) - 0.25
    out2 = jax.block_until_ready(hd_loss(pred2, gt2, tn_max=64, tm_max=128))
    ref2 = jax.block_until_ready(hd_loss_ref(pred2, gt2))
    assert jnp.allclose(out2, ref2, atol=1e-4, rtol=1e-4), (out2, ref2)

    print("KERNEL_OK")
</pallas_src>

<mosaic_0001>
module attributes {stable_mosaic.version = 11 : i64} {
  func.func @_hd_kernel(%arg0: i32, %arg1: i32, %arg2: i32, %arg3: memref<1x64x3xf32, #tpu.memory_space<vmem>>, %arg4: memref<1x3x128xf32, #tpu.memory_space<vmem>>, %arg5: memref<1x1x128xf32, #tpu.memory_space<vmem>>, %arg6: memref<64x128xf32, #tpu.memory_space<vmem>>, %arg7: memref<1x8x128xf32, #tpu.memory_space<vmem>>, %arg8: memref<1x1xf32, #tpu.memory_space<vmem>>, %arg9: memref<1x1xf32, #tpu.memory_space<vmem>>) attributes {dimension_semantics = [#tpu.dimension_semantics<parallel>, #tpu.dimension_semantics<arbitrary>, #tpu.dimension_semantics<arbitrary>], iteration_bounds = array<i64: 2, 1, 1>, scalar_prefetch = 0 : i64, scratch_operands = 4 : i64, tpu.core_type = #tpu.core_type<tc>, window_params = [{transform_indices = @transform_0, window_bounds = array<i64: 1, 64, 3>}, {transform_indices = @transform_1, window_bounds = array<i64: 1, 3, 128>}, {transform_indices = @transform_2, window_bounds = array<i64: 1, 1, 128>}]} {
    %c0 = arith.constant 0 : index
    %c0_0 = arith.constant 0 : index
    %c0_1 = arith.constant 0 : index
    %0 = vector.load %arg3[%c0, %c0_0, %c0_1] : memref<1x64x3xf32, #tpu.memory_space<vmem>>, vector<1x64x3xf32>
    %1 = vector.shape_cast %0 : vector<1x64x3xf32> to vector<64x3xf32>
    %c0_2 = arith.constant 0 : index
    %c0_3 = arith.constant 0 : index
    %c0_4 = arith.constant 0 : index
    %2 = vector.load %arg4[%c0_2, %c0_3, %c0_4] : memref<1x3x128xf32, #tpu.memory_space<vmem>>, vector<1x3x128xf32>
    %3 = vector.shape_cast %2 : vector<1x3x128xf32> to vector<3x128xf32>
    %4 = vector.extract_strided_slice %1 {offsets = [0, 0], sizes = [64, 1], strides = [1, 1]} : vector<64x3xf32> to vector<64x1xf32>
    %5 = vector.extract_strided_slice %3 {offsets = [0, 0], sizes = [1, 128], strides = [1, 1]} : vector<3x128xf32> to vector<1x128xf32>
    %6 = vector.broadcast %4 : vector<64x1xf32> to vector<64x128xf32>
    %7 = vector.broadcast %5 : vector<1x128xf32> to vector<64x128xf32>
    %8 = arith.subf %6, %7 : vector<64x128xf32>
    %9 = arith.mulf %8, %8 : vector<64x128xf32>
    %10 = vector.extract_strided_slice %1 {offsets = [0, 1], sizes = [64, 1], strides = [1, 1]} : vector<64x3xf32> to vector<64x1xf32>
    %11 = vector.extract_strided_slice %3 {offsets = [1, 0], sizes = [1, 128], strides = [1, 1]} : vector<3x128xf32> to vector<1x128xf32>
    %12 = vector.broadcast %10 : vector<64x1xf32> to vector<64x128xf32>
    %13 = vector.broadcast %11 : vector<1x128xf32> to vector<64x128xf32>
    %14 = arith.subf %12, %13 : vector<64x128xf32>
    %15 = arith.mulf %14, %14 : vector<64x128xf32>
    %16 = arith.addf %9, %15 : vector<64x128xf32>
    %17 = vector.extract_strided_slice %1 {offsets = [0, 2], sizes = [64, 1], strides = [1, 1]} : vector<64x3xf32> to vector<64x1xf32>
    %18 = vector.extract_strided_slice %3 {offsets = [2, 0], sizes = [1, 128], strides = [1, 1]} : vector<3x128xf32> to vector<1x128xf32>
    %19 = vector.broadcast %17 : vector<64x1xf32> to vector<64x128xf32>
    %20 = vector.broadcast %18 : vector<1x128xf32> to vector<64x128xf32>
    %21 = arith.subf %19, %20 : vector<64x128xf32>
    %22 = arith.mulf %21, %21 : vector<64x128xf32>
    %23 = arith.addf %16, %22 : vector<64x128xf32>
    %c0_i32 = arith.constant 0 : i32
    %24 = arith.cmpi eq, %arg2, %c0_i32 : i32
    %25 = arith.extui %24 : i1 to i32
    %c0_i32_5 = arith.constant 0 : i32
    %26 = arith.cmpi ne, %25, %c0_i32_5 : i32
    scf.if %26 {
      %cst = arith.constant 0x7F800000 : f32
      %62 = vector.broadcast %cst : f32 to vector<64x128xf32>
      %c0_21 = arith.constant 0 : index
      %c0_22 = arith.constant 0 : index
      %63 = vector.load %arg6[%c0_21, %c0_22] : memref<64x128xf32, #tpu.memory_space<vmem>>, vector<64x128xf32>
      tpu.vector_store %arg6[%c0_21, %c0_22], %62 {strides = array<i32>} : memref<64x128xf32, #tpu.memory_space<vmem>>, vector<64x128xf32>,
    } else {
    }
    %c0_6 = arith.constant 0 : index
    %c0_7 = arith.constant 0 : index
    %27 = vector.load %arg6[%c0_6, %c0_7] : memref<64x128xf32, #tpu.memory_space<vmem>>, vector<64x128xf32>
    %28 = arith.minimumf %27, %23 : vector<64x128xf32>
    %c0_8 = arith.constant 0 : index
    %c0_9 = arith.constant 0 : index
    %29 = vector.load %arg6[%c0_8, %c0_9] : memref<64x128xf32, #tpu.memory_space<vmem>>, vector<64x128xf32>
    tpu.vector_store %arg6[%c0_8, %c0_9], %28 {strides = array<i32>} : memref<64x128xf32, #tpu.memory_space<vmem>>, vector<64x128xf32>,
    %c0_i32_10 = arith.constant 0 : i32
    %30 = arith.cmpi eq, %arg2, %c0_i32_10 : i32
    %31 = arith.extui %30 : i1 to i32
    %c0_i32_11 = arith.constant 0 : i32
    %32 = arith.cmpi ne, %31, %c0_i32_11 : i32
    scf.if %32 {
      %cst = arith.constant dense<0x7F800000> : vector<64xf32>
      %62 = vector.multi_reduction <minimumf>, %28, %cst [1] : vector<64x128xf32> to vector<64xf32>
      %63 = vector.shape_cast %62 : vector<64xf32> to vector<64x1xf32>
      %cst_21 = arith.constant dense<0xFF800000> : vector<1xf32>
      %64 = vector.multi_reduction <maximumf>, %63, %cst_21 [0] : vector<64x1xf32> to vector<1xf32>
      %65 = vector.shape_cast %64 : vector<1xf32> to vector<1x1xf32>
      %c0_i32_22 = arith.constant 0 : i32
      %66 = arith.cmpi eq, %arg1, %c0_i32_22 : i32
      %cst_23 = arith.constant 0xFF800000 : f32
      %67 = vector.broadcast %cst_23 : f32 to vector<1x1xf32>
      %c0_24 = arith.constant 0 : index
      %c0_25 = arith.constant 0 : index
      %68 = vector.load %arg8[%c0_24, %c0_25] : memref<1x1xf32, #tpu.memory_space<vmem>>, vector<1x1xf32>
      %69 = arith.select %66, %67, %68 : vector<1x1xf32>
      %70 = arith.maximumf %69, %65 : vector<1x1xf32>
      %c0_26 = arith.constant 0 : index
      %c0_27 = arith.constant 0 : index
      %71 = vector.load %arg8[%c0_26, %c0_27] : memref<1x1xf32, #tpu.memory_space<vmem>>, vector<1x1xf32>
      tpu.vector_store %arg8[%c0_26, %c0_27], %70 {strides = array<i32>} : memref<1x1xf32, #tpu.memory_space<vmem>>, vector<1x1xf32>,
    } else {
    }
    %33 = vector.extract_strided_slice %23 {offsets = [0, 0], sizes = [8, 128], strides = [1, 1]} : vector<64x128xf32> to vector<8x128xf32>
    %34 = vector.extract_strided_slice %23 {offsets = [8, 0], sizes = [8, 128], strides = [1, 1]} : vector<64x128xf32> to vector<8x128xf32>
    %35 = arith.minimumf %33, %34 : vector<8x128xf32>
    %36 = vector.extract_strided_slice %23 {offsets = [16, 0], sizes = [8, 128], strides = [1, 1]} : vector<64x128xf32> to vector<8x128xf32>
    %37 = arith.minimumf %35, %36 : vector<8x128xf32>
    %38 = vector.extract_strided_slice %23 {offsets = [24, 0], sizes = [8, 128], strides = [1, 1]} : vector<64x128xf32> to vector<8x128xf32>
    %39 = arith.minimumf %37, %38 : vector<8x128xf32>
    %40 = vector.extract_strided_slice %23 {offsets = [32, 0], sizes = [8, 128], strides = [1, 1]} : vector<64x128xf32> to vector<8x128xf32>
    %41 = arith.minimumf %39, %40 : vector<8x128xf32>
    %42 = vector.extract_strided_slice %23 {offsets = [40, 0], sizes = [8, 128], strides = [1, 1]} : vector<64x128xf32> to vector<8x128xf32>
    %43 = arith.minimumf %41, %42 : vector<8x128xf32>
    %44 = vector.extract_strided_slice %23 {offsets = [48, 0], sizes = [8, 128], strides = [1, 1]} : vector<64x128xf32> to vector<8x128xf32>
    %45 = arith.minimumf %43, %44 : vector<8x128xf32>
    %46 = vector.extract_strided_slice %23 {offsets = [56, 0], sizes = [8, 128], strides = [1, 1]} : vector<64x128xf32> to vector<8x128xf32>
    %47 = arith.minimumf %45, %46 : vector<8x128xf32>
    %c0_i32_12 = arith.constant 0 : i32
    %48 = arith.cmpi eq, %arg1, %c0_i32_12 : i32
    %49 = arith.extui %48 : i1 to i32
    %c0_i32_13 = arith.constant 0 : i32
    %50 = arith.cmpi ne, %49, %c0_i32_13 : i32
    scf.if %50 {
      %62 = arith.index_cast %arg2 : i32 to index
      %c0_21 = arith.constant 0 : index
      %c0_22 = arith.constant 0 : index
      %63 = vector.load %arg7[%62, %c0_21, %c0_22] : memref<1x8x128xf32, #tpu.memory_space<vmem>>, vector<1x8x128xf32>
      %64 = vector.shape_cast %63 : vector<1x8x128xf32> to vector<8x128xf32>
      %65 = vector.shape_cast %47 : vector<8x128xf32> to vector<1x8x128xf32>
      tpu.vector_store %arg7[%62, %c0_21, %c0_22], %65 {strides = array<i32>} : memref<1x8x128xf32, #tpu.memory_space<vmem>>, vector<1x8x128xf32>,
    } else {
    }
    %c0_i32_14 = arith.constant 0 : i32
    %51 = arith.cmpi ne, %arg1, %c0_i32_14 : i32
    %52 = arith.extui %51 : i1 to i32
    %c0_i32_15 = arith.constant 0 : i32
    %53 = arith.cmpi ne, %52, %c0_i32_15 : i32
    scf.if %53 {
      %62 = arith.index_cast %arg2 : i32 to index
      %c0_21 = arith.constant 0 : index
      %c0_22 = arith.constant 0 : index
      %63 = vector.load %arg7[%62, %c0_21, %c0_22] : memref<1x8x128xf32, #tpu.memory_space<vmem>>, vector<1x8x128xf32>
      %64 = vector.shape_cast %63 : vector<1x8x128xf32> to vector<8x128xf32>
      %65 = arith.minimumf %64, %47 : vector<8x128xf32>
      %66 = arith.index_cast %arg2 : i32 to index
      %c0_23 = arith.constant 0 : index
      %c0_24 = arith.constant 0 : index
      %67 = vector.load %arg7[%66, %c0_23, %c0_24] : memref<1x8x128xf32, #tpu.memory_space<vmem>>, vector<1x8x128xf32>
      %68 = vector.shape_cast %67 : vector<1x8x128xf32> to vector<8x128xf32>
      %69 = vector.shape_cast %65 : vector<8x128xf32> to vector<1x8x128xf32>
      tpu.vector_store %arg7[%66, %c0_23, %c0_24], %69 {strides = array<i32>} : memref<1x8x128xf32, #tpu.memory_space<vmem>>, vector<1x8x128xf32>,
    } else {
    }
    %c0_i32_16 = arith.constant 0 : i32
    %54 = arith.cmpi eq, %arg1, %c0_i32_16 : i32
    %55 = arith.extui %54 : i1 to i32
    %c0_i32_17 = arith.constant 0 : i32
    %56 = arith.cmpi ne, %55, %c0_i32_17 : i32
    scf.if %56 {
      %62 = arith.index_cast %arg2 : i32 to index
      %c0_21 = arith.constant 0 : index
      %c0_22 = arith.constant 0 : index
      %63 = vector.load %arg7[%62, %c0_21, %c0_22] : memref<1x8x128xf32, #tpu.memory_space<vmem>>, vector<1x8x128xf32>
      %64 = vector.shape_cast %63 : vector<1x8x128xf32> to vector<8x128xf32>
      %cst = arith.constant dense<0x7F800000> : vector<128xf32>
      %65 = vector.multi_reduction <minimumf>, %64, %cst [0] : vector<8x128xf32> to vector<128xf32>
      %66 = vector.shape_cast %65 : vector<128xf32> to vector<1x128xf32>
      %cst_23 = arith.constant dense<0xFF800000> : vector<1xf32>
      %67 = vector.multi_reduction <maximumf>, %66, %cst_23 [1] : vector<1x128xf32> to vector<1xf32>
      %68 = vector.shape_cast %67 : vector<1xf32> to vector<1x1xf32>
      %c0_i32_24 = arith.constant 0 : i32
      %69 = arith.cmpi eq, %arg2, %c0_i32_24 : i32
      %cst_25 = arith.constant 0xFF800000 : f32
      %70 = vector.broadcast %cst_25 : f32 to vector<1x1xf32>
      %c0_26 = arith.constant 0 : index
      %c0_27 = arith.constant 0 : index
      %71 = vector.load %arg9[%c0_26, %c0_27] : memref<1x1xf32, #tpu.memory_space<vmem>>, vector<1x1xf32>
      %72 = arith.select %69, %70, %71 : vector<1x1xf32>
      %73 = arith.maximumf %72, %68 : vector<1x1xf32>
      %c0_28 = arith.constant 0 : index
      %c0_29 = arith.constant 0 : index
      %74 = vector.load %arg9[%c0_28, %c0_29] : memref<1x1xf32, #tpu.memory_space<vmem>>, vector<1x1xf32>
      tpu.vector_store %arg9[%c0_28, %c0_29], %73 {strides = array<i32>} : memref<1x1xf32, #tpu.memory_space<vmem>>, vector<1x1xf32>,
    } else {
    }
    %c0_i32_18 = arith.constant 0 : i32
    %57 = arith.cmpi eq, %arg1, %c0_i32_18 : i32
    %c0_i32_19 = arith.constant 0 : i32
    %58 = arith.cmpi eq, %arg2, %c0_i32_19 : i32
    %59 = arith.andi %57, %58 : i1
    %60 = arith.extui %59 : i1 to i32
    %c0_i32_20 = arith.constant 0 : i32
    %61 = arith.cmpi ne, %60, %c0_i32_20 : i32
    scf.if %61 {
      %c0_21 = arith.constant 0 : index
      %c0_22 = arith.constant 0 : index
      %62 = vector.load %arg8[%c0_21, %c0_22] : memref<1x1xf32, #tpu.memory_space<vmem>>, vector<1x1xf32>
      %c0_23 = arith.constant 0 : index
      %c0_24 = arith.constant 0 : index
      %63 = vector.load %arg9[%c0_23, %c0_24] : memref<1x1xf32, #tpu.memory_space<vmem>>, vector<1x1xf32>
      %64 = arith.maximumf %62, %63 : vector<1x1xf32>
      %cst = arith.constant 0.000000e+00 : f32
      %65 = vector.broadcast %cst : f32 to vector<1x1xf32>
      %66 = arith.maximumf %64, %65 : vector<1x1xf32>
      %67 = math.sqrt %66 : vector<1x1xf32>
      %68 = vector.shape_cast %67 : vector<1x1xf32> to vector<1x1xf32>
      %69 = vector.broadcast %68 : vector<1x1xf32> to vector<1x128xf32>
      %c0_25 = arith.constant 0 : index
      %c0_26 = arith.constant 0 : index
      %c0_27 = arith.constant 0 : index
      %70 = vector.load %arg5[%c0_25, %c0_26, %c0_27] : memref<1x1x128xf32, #tpu.memory_space<vmem>>, vector<1x1x128xf32>
      %71 = vector.shape_cast %70 : vector<1x1x128xf32> to vector<1x128xf32>
      %72 = vector.shape_cast %69 : vector<1x128xf32> to vector<1x1x128xf32>
      tpu.vector_store %arg5[%c0_25, %c0_26, %c0_27], %72 {strides = array<i32>} : memref<1x1x128xf32, #tpu.memory_space<vmem>>, vector<1x1x128xf32>,
    } else {
    }
    return
  }
  func.func @transform_0(%arg0: i32, %arg1: i32, %arg2: i32) -> (i32, i32, i32) {
    %c0_i32 = arith.constant 0 : i32
    %c0_i32_0 = arith.constant 0 : i32
    return %arg0, %arg1, %c0_i32 : i32, i32, i32
  }
  func.func @transform_1(%arg0: i32, %arg1: i32, %arg2: i32) -> (i32, i32, i32) {
    %c0_i32 = arith.constant 0 : i32
    %c0_i32_0 = arith.constant 0 : i32
    return %arg0, %c0_i32, %arg2 : i32, i32, i32
  }
  func.func @transform_2(%arg0: i32, %arg1: i32, %arg2: i32) -> (i32, i32, i32) {
    %c0_i32 = arith.constant 0 : i32
    %c0_i32_0 = arith.constant 0 : i32
    %c0_i32_1 = arith.constant 0 : i32
    return %arg0, %c0_i32, %c0_i32_0 : i32, i32, i32
  }
}

</mosaic_0001>

<bundles_post_ra>
// kernel: tpu_custom_call.1
= control target key start
LH: loop header
LB: loop body
LE: loop exit
PB: predicated region body
PF: predicated region fallthrough
CT: control target
= control target key end

     0   :  { %7 = vsyncpa [#allocation7], 0  ;;  %s984_s0 = inlined_call_operand.vmem [shape: f32[2,64,3], index: 0, kind: input, shape index: {}]   ;;  %s985_s1 = inlined_call_operand.vmem [shape: f32[2,3,128], index: 1, kind: input, shape index: {}]   ;;  %s986_s2 = inlined_call_operand.hbm [shape: f32[2,1,128], index: 2, kind: output, shape index: {}]  }
   0x1   :  { %9 = vsyncpa [#allocation7 + $0x1], 0  ;;  %s829_s9 = smov 0   ;;  %s831_s10 = smov 0  }
   0x2   :  { %s833_s11 = smov 0   ;;  %s835_s12 = smov 0  }
   0x3   :  { %s837_s13 = smov 0   ;;  %s839_s14 = smov 0  }
   0x4 LB: > { %s646_s15 = sadd.s32 4294967295, %s808_s14   ;;  %s647_s16 = sadd.s32 4294967294, %s808_s14   ;;  %s808_s14 = sphi %s839_s14, %s15_s14   ;;  %s804_s13 = sphi %s837_s13, %s993_s13   ;;  %s800_s12 = sphi %s835_s12, %s992_s12   ;;  %s796_s11 = sphi %s833_s11, %s991_s11   ;;  %s792_s10 = sphi %s831_s10, %s990_s10   ;;  %s788_s9 = sphi %s829_s9, %s989_s9  }
   0x5   : > { %s34_s17 = sadd.s32 1, %s804_s13  ;;  %s97_s18 = sadd.s32 1, %s796_s11 }
   0x6   : > { %p36_p0 = scmp.ge.s32.totalorder %s34_s17, 2  ;;  %p107_p1 = scmp.ne.s32.totalorder %s796_s11, %s792_s10 }
   0x7   : > { %p108_p2 = scmp.eq.s32.totalorder %s646_s15, 1  ;;  %p113_p3 = scmp.ne.s32.totalorder %s792_s10, %s788_s9 }
   0x8   : > { %s995_s17 = smov (%p36_p0, %s34_s17), 0  ;;  %p114_p5 = scmp.eq.s32.totalorder %s647_s16, 1 }
   0x9   : > { %p869_p4 = por %p108_p2, %p107_p1  ;;  %s94_s20 = ssub.s32 %s804_s13, %s995_s17 }
   0xa   : > { %p650_p6 = scmp.ge.s32.totalorder %s808_s14, 1  ;;  %p95_p7 = scmp.eq.s32.totalorder %s94_s20, 0 }
   0xb   : > { %p876_p8 = por %p114_p5, %p113_p3  ;;  %p155_p9 = scmp.lt.s32.totalorder %s808_s14, 3 }
   0xc   : > { %s882_s22 = scalar_select %p95_p7, %s796_s11, %s97_s18  }
   0xd   : > { %p156_p10 = pnand %p650_p6, %p155_p9 }
   0xe   : > { %p188_p11 = scmp.lt.s32.totalorder (!%p156_p10), %s800_s12, 1  ;;  %s185_s4 = sand.u32 (!%p156_p10), 1, %s792_s10  }
   0xf   : > { %159 = sbr.rel (%p156_p10) target bundleno = 540 (0x21c), region = 28  ;;  %s654_s5 = sshll.u32 (!%p156_p10), %s800_s12, 4 }
  0x10   : > { %s186_s6 = scalar_lea.vmem (!%p156_p10), [#allocation6], %s185_s4  ;;  %s551_s16 = scalar_lea.hbm (!%p156_p10), %s986_s2, %s654_s5 }
  0x11   : > { %s553_s7 = sshll.u32 (!%p156_p10), %s186_s6, 4  ;;  %s541_s18 = scalar_lea.sflag (!%p156_p10), [#allocation7], %s185_s4  ;;  %s554_s7 = int_to_ptr.vmem [resolvable:$true] %s553_s7 }
  0x12   : > { %s732_s20 = scalar_lea.vmem (!%p156_p10), %s554_s7, 16 }
  0x13   : > { %p733_p12 = scmp.ne.s32.totalorder (!%p156_p10), %s554_s7, %s732_s20 }
  0x14   : > { %v810_v0 = vmov 1   ;;  %v811_v1 = vmov 0   ;;  %s886_s23 = scalar_select %p188_p11, %s800_s12, 1  ;;  %v812_v6 = vmov 2   ;;  %v253_v11 = vlaneseq }
  0x15   : > { %717 = vset.pattern.permute.xlu1 %v810_v0  ;;  %716 = vset.pattern.permute.xlu0 %v811_v1  ;;  %vm468_vm0 = vcmask 0   ;;  %p734_p13 = pnand %p733_p12, %p869_p4 }
  0x16   : > { %s657_s24 = sshll.u32 %s886_s23, 6  ;;  %s653_s28 = sshll.u32 %s886_s23, 2  ;;  %v903_v12 = vshrl.u32 %v253_v11, 7 }
  0x17   : > { %s892_s27 = scalar_lea.vmem %s984_s0, %s657_s24  ;;  %s203_s3 = scalar_lea.vmem %s985_s1, %s653_s28 }
  0x18   : > { %v204_v2 = vld [vmem:[%s892_s27] sm:$0xff]  ;;  %v205_v3 = vld [vmem:[%s892_s27 + $0x8] sm:$0xff]  ;;  %v206_v4 = vld [vmem:[%s892_s27 + $0x10] sm:$0xff]  ;;  %v255_v15 = vsub.s32 0, %v903_v12  ;;  %v307_v16 = vsub.s32 1, %v903_v12  ;;  %v367_v22 = vsub.s32 2, %v903_v12  ;;  %p735_p0 = pneg %p734_p13 }
  0x19   : > { %274 = vperm.xlu1 %717, %v204_v2   ;;  %215 = vperm.xlu0 %716, %v204_v2   ;;  %v209_v5 = vld [vmem:[%s892_s27 + $0x28] sm:$0xff]  ;;  %v207_v7 = vld [vmem:[%s892_s27 + $0x18] sm:$0xff]  ;;  %v208_v8 = vld [vmem:[%s892_s27 + $0x20] sm:$0xff]  ;;  %s813_s23 = smov [#allocation6]  }
  0x1a   : > { %v210_v9 = vld [vmem:[%s892_s27 + $0x30] sm:$0xff]  ;;  %v211_v10 = vld [vmem:[%s892_s27 + $0x38] sm:$0xff]  ;;  %v212_v17 = vld [vmem:[%s203_s3] sm:$0x7]  ;;  %s736_s12 = sshll.u32 %s813_s23, 4  ;;  %s737_s12 = int_to_ptr.vmem [resolvable:$false] %s736_s12 }
  0x1b   : > { %v912_v20 = vrot.slane %v212_v17, %v255_v15  ;;  %v914_v21 = vrot.slane %v212_v17, %v307_v16  ;;  %v919_v27 = vrot.slane %v212_v17, %v367_v22  ;;  %s738_s24 = scalar_lea.vmem %s737_s12, 32  ;;  %p739_p1 = scmp.lt.s32.totalorder %s554_s7, %s737_s12 }
  0x1c   : > { %p740_p2 = scmp.lt.s32.totalorder %s738_s24, %s732_s20 }
  0x1d   : > { %278 = vperm.xlu1 %717, %v205_v3   ;;  %220 = vperm.xlu0 %716, %v205_v3  }
  0x1e   : > { %p741_p3 = por %p740_p2, %p739_p1 }
  0x20   : > { %p742_p5 = pnand %p741_p3, %p735_p0 }
  0x21   : > { %282 = vperm.xlu1 %717, %v206_v4   ;;  %225 = vperm.xlu0 %716, %v206_v4  }
  0x25   : > { %718 = vset.pattern.permute.xlu1 %v812_v6  ;;  %240 = vperm.xlu0 %716, %v209_v5  }
  0x26   : > { %338 = vperm.xlu1 %718, %v205_v3  }
  0x29   : > { %723 = vset.pattern.permute.xlu0 %v810_v0 }
  0x2a   : > { %719 = vset.pattern.permute.xlu1 %v811_v1  ;;  %286 = vperm.xlu0 %723, %v207_v7  }
  0x2b   : > { %230 = vperm.xlu1 %719, %v207_v7  }
  0x2e   : > { %290 = vperm.xlu0 %723, %v208_v8  }
  0x2f   : > { %720 = vset.pattern.permute.xlu1 %v812_v6 }
  0x30   : > { %342 = vperm.xlu1 %720, %v206_v4  }
  0x32   : > { %294 = vperm.xlu0 %723, %v209_v5  }
  0x34   : > { %721 = vset.pattern.permute.xlu1 %v811_v1 }
  0x35   : > { %235 = vperm.xlu1 %721, %v208_v8  }
  0x36   : > { %725 = vset.pattern.permute.xlu0 %v812_v6 }
  0x37   : > { %334 = vperm.xlu0 %725, %v204_v2  }
  0x39   : > { %722 = vset.pattern.permute.xlu1 %v812_v6 }
  0x3a   : > { %346 = vperm.xlu1 %722, %v207_v7  }
  0x3b   : > { %350 = vperm.xlu0 %725, %v208_v8  }
  0x3e   : > { %724 = vset.pattern.permute.xlu1 %v811_v1 }
  0x3f   : > { %245 = vperm.xlu1 %724, %v210_v9   ;;  %362 = vperm.xlu0 %725, %v211_v10  }
  0x43   : > { %250 = vperm.xlu1 %724, %v211_v10   ;;  %729 = vset.pattern.permute.xlu0 %v811_v1 }
  0x47   : > { %726 = vset.pattern.permute.xlu1 %v810_v0 }
  0x48   : > { %298 = vperm.xlu1 %726, %v210_v9  }
  0x4c   : > { %302 = vperm.xlu1 %726, %v211_v10  }
  0x50   : > { %727 = vset.pattern.permute.xlu1 %v812_v6 }
  0x51   : > { %354 = vperm.xlu1 %727, %v209_v5  }
  0x55   : > { %358 = vperm.xlu1 %727, %v210_v9  }
  0x59   : > { %728 = vset.pattern.permute.xlu1 %v811_v1 }
  0x94   : > { %v275_v13 = vpop.permute.xlu1 %274  ;;  %v216_v14 = vpop.permute.xlu0 %215 }
  0x95   : > { %v309_v45 = vsub.f32 %v275_v13, %v914_v21  ;;  %v257_v46 = vsub.f32 %v216_v14, %v912_v20 }
  0x97   : > { %v317_v54 = vmul.f32 %v309_v45, %v309_v45  ;;  %v265_v55 = vmul.f32 %v257_v46, %v257_v46 }
  0x98   : > { %v279_v18 = vpop.permute.xlu1 %278  ;;  %v221_v19 = vpop.permute.xlu0 %220 }
  0x99   : > { %v310_v23 = vsub.f32 %v279_v18, %v914_v21  ;;  %v258_v24 = vsub.f32 %v221_v19, %v912_v20  ;;  %v325_v62 = vadd.f32 %v317_v54, %v265_v55 }
  0x9b   : > { %v318_v28 = vmul.f32 %v310_v23, %v310_v23  ;;  %v266_v29 = vmul.f32 %v258_v24, %v258_v24 }
  0x9c   : > { %v283_v25 = vpop.permute.xlu1 %282  ;;  %v226_v26 = vpop.permute.xlu0 %225 }
  0x9d   : > { %v326_v33 = vadd.f32 %v318_v28, %v266_v29  ;;  %v311_v36 = vsub.f32 %v283_v25, %v914_v21  ;;  %v259_v37 = vsub.f32 %v226_v26, %v912_v20 }
  0x9f   : > { %v319_v41 = vmul.f32 %v311_v36, %v311_v36  ;;  %v267_v42 = vmul.f32 %v259_v37, %v259_v37 }
  0xa0   : > { %v241_v30 = vpop.permute.xlu0 %240 }
  0xa1   : > { %v339_v31 = vpop.permute.xlu1 %338  ;;  %v327_v48 = vadd.f32 %v319_v41, %v267_v42  ;;  %v262_v23 = vsub.f32 %v241_v30, %v912_v20 }
  0xa2   : > { %v370_v32 = vsub.f32 %v339_v31, %v919_v27 }
  0xa4   : > { %v378_v34 = vmul.f32 %v370_v32, %v370_v32  ;;  %v270_v32 = vmul.f32 %v262_v23, %v262_v23 }
  0xa5   : > { %v287_v35 = vpop.permute.xlu0 %286 }
  0xa6   : > { %v231_v38 = vpop.permute.xlu1 %230  ;;  %v386_v39 = vadd.f32 %v378_v34, %v326_v33  ;;  %v312_v50 = vsub.f32 %v287_v35, %v914_v21 }
  0xa7   : > { %v260_v51 = vsub.f32 %v231_v38, %v912_v20 }
  0xa8   : > { %434 = vmin.xlane.f32.xlu0 %v386_v39  ;;  %v320_v60 = vmul.f32 %v312_v50, %v312_v50 }
  0xa9   : > { %v291_v40 = vpop.permute.xlu0 %290  ;;  %v268_v61 = vmul.f32 %v260_v51, %v260_v51 }
  0xaa   : > { %v313_v56 = vsub.f32 %v291_v40, %v914_v21 }
  0xab   : > { %v343_v43 = vpop.permute.xlu1 %342  ;;  %v328_v7 = vadd.f32 %v320_v60, %v268_v61 }
  0xac   : > { %v371_v44 = vsub.f32 %v343_v43, %v919_v27  ;;  %v321_v63 = vmul.f32 %v313_v56, %v313_v56 }
  0xad   : > { %v295_v47 = vpop.permute.xlu0 %294 }
  0xae   : > { %v379_v49 = vmul.f32 %v371_v44, %v371_v44  ;;  %v314_v18 = vsub.f32 %v295_v47, %v914_v21 }
  0xb0   : > { %v236_v52 = vpop.permute.xlu1 %235  ;;  %v387_v53 = vadd.f32 %v379_v49, %v327_v48  ;;  %v322_v25 = vmul.f32 %v314_v18, %v314_v18 }
  0xb1   : > { %v261_v57 = vsub.f32 %v236_v52, %v912_v20 }
  0xb2   : > { %436 = vmin.xlane.f32.xlu0 %v387_v53  ;;  %v335_v58 = vpop.permute.xlu0 %334  ;;  %v330_v37 = vadd.f32 %v322_v25, %v270_v32 }
  0xb3   : > { %v369_v59 = vsub.f32 %v335_v58, %v919_v27  ;;  %v269_v0 = vmul.f32 %v261_v57, %v261_v57 }
  0xb5   : > { %v377_v1 = vmul.f32 %v369_v59, %v369_v59  ;;  %v347_v2 = vpop.permute.xlu1 %346  ;;  %v329_v9 = vadd.f32 %v321_v63, %v269_v0 }
  0xb6   : > { %v372_v3 = vsub.f32 %v347_v2, %v919_v27  ;;  %v351_v4 = vpop.permute.xlu0 %350 }
  0xb7   : > { %v373_v5 = vsub.f32 %v351_v4, %v919_v27  ;;  %v385_v6 = vadd.f32 %v377_v1, %v325_v62 }
  0xb8   : > { %v380_v8 = vmul.f32 %v372_v3, %v372_v3 }
  0xb9   : > { %v381_v10 = vmul.f32 %v373_v5, %v373_v5  ;;  %432 = vmin.xlane.f32.xlu1 %v385_v6  ;;  %v470_v19 = vmin.f32 %v385_v6, %v386_v39 }
  0xba   : > { %v246_v11 = vpop.permute.xlu1 %245  ;;  %v388_v13 = vadd.f32 %v380_v8, %v328_v7  ;;  %v363_v31 = vpop.permute.xlu0 %362 }
  0xbb   : > { %v389_v14 = vadd.f32 %v381_v10, %v329_v9  ;;  %v471_v26 = vmin.f32 %v470_v19, %v387_v53  ;;  %v263_v34 = vsub.f32 %v246_v11, %v912_v20  ;;  %v376_v38 = vsub.f32 %v363_v31, %v919_v27 }
  0xbd   : > { %438 = vmin.xlane.f32.xlu1 %v388_v13  ;;  %440 = vmin.xlane.f32.xlu0 %v389_v14  ;;  %v472_v30 = vmin.f32 %v471_v26, %v388_v13  ;;  %v271_v43 = vmul.f32 %v263_v34, %v263_v34  ;;  %v384_v48 = vmul.f32 %v376_v38, %v376_v38 }
  0xbe   : > { %v251_v16 = vpop.permute.xlu1 %250 }
  0xbf   : > { %v264_v28 = vsub.f32 %v251_v16, %v912_v20  ;;  %v473_v46 = vmin.f32 %v472_v30, %v389_v14 }
  0xc1   : > { %v272_v39 = vmul.f32 %v264_v28, %v264_v28 }
  0xc3   : > { %v299_v17 = vpop.permute.xlu1 %298 }
  0xc4   : > { %v315_v29 = vsub.f32 %v299_v17, %v914_v21 }
  0xc6   : > { %v323_v40 = vmul.f32 %v315_v29, %v315_v29 }
  0xc7   : > { %v303_v22 = vpop.permute.xlu1 %302 }
  0xc8   : > { %v316_v24 = vsub.f32 %v303_v22, %v914_v21  ;;  %v331_v47 = vadd.f32 %v323_v40, %v271_v43 }
  0xca   : > { %v324_v35 = vmul.f32 %v316_v24, %v316_v24 }
  0xcc   : > { %v355_v33 = vpop.permute.xlu1 %354  ;;  %v332_v44 = vadd.f32 %v324_v35, %v272_v39 }
  0xcd   : > { %v374_v36 = vsub.f32 %v355_v33, %v919_v27 }
  0xce   : > { %v392_v51 = vadd.f32 %v384_v48, %v332_v44 }
  0xcf   : > { %v382_v41 = vmul.f32 %v374_v36, %v374_v36 }
  0xd0   : > { %v359_v42 = vpop.permute.xlu1 %358 }
  0xd1   : > { %v375_v21 = vsub.f32 %v359_v42, %v919_v27  ;;  %v390_v45 = vadd.f32 %v382_v41, %v330_v37 }
  0xd3   : > { %v383_v20 = vmul.f32 %v375_v21, %v375_v21  ;;  %442 = vmin.xlane.f32.xlu1 %v390_v45  ;;  %v474_v49 = vmin.f32 %v473_v46, %v390_v45 }
  0xd5   : > { %v391_v50 = vadd.f32 %v383_v20, %v331_v47 }
  0xd7   : > { %444 = vmin.xlane.f32.xlu0 %v391_v50  ;;  %v475_v52 = vmin.f32 %v474_v49, %v391_v50  ;;  %446 = vmin.xlane.f32.xlu1 %v392_v51 }
  0xd9   : > { %v476_v53 = vmin.f32 %v475_v52, %v392_v51 }
  0xdb   : > { %v499_v54 = vrot.slane %v476_v53, 4 }
  0xdd   : > { %v500_v55 = vmin.f32 %v476_v53, %v499_v54 }
  0xdf   : > { %v501_v56 = vrot.slane %v500_v55, 2 }
  0xe1   : > { %v502_v57 = vmin.f32 %v500_v55, %v501_v56 }
  0xe3   : > { %v503_v58 = vrot.slane %v502_v57, 1 }
  0xe5   : > { %v504_v59 = vmin.f32 %v502_v57, %v503_v58 }
  0xe7   : > { %505 = vmax.xlane.f32.xlu0 %v504_v59 }
 0x131   : > { %v435_v60 = vpop.xlane.xlu0 %434 }
 0x13b   : > { %v437_v61 = vpop.xlane.xlu0 %436 }
 0x142   : > { %v433_v27 = vpop.xlane.xlu1 %432 }
 0x146   : > { %v439_v62 = vpop.xlane.xlu1 %438  ;;  %v441_v63 = vpop.xlane.xlu0 %440 }
 0x147   : > { %v448_v4 = vmax.f32 %v433_v27, %v441_v63 }
 0x15c   : > { %v443_v0 = vpop.xlane.xlu1 %442 }
 0x15d   : > { %v449_v1 = vmax.f32 %v435_v60, %v443_v0 }
 0x15f   : > { %v452_v7 = vmax.f32 %v448_v4, %v449_v1 }
 0x160   : > { %v447_v2 = vpop.xlane.xlu1 %446  ;;  %v445_v3 = vpop.xlane.xlu0 %444 }
 0x161   : > { %v451_v5 = vmax.f32 %v439_v62, %v447_v2  ;;  %v450_v6 = vmax.f32 %v437_v61, %v445_v3 }
 0x163   : > { %v453_v8 = vmax.f32 %v450_v6, %v451_v5 }
 0x165   : > { %v454_v9 = vmax.f32 %v452_v7, %v453_v8 }
 0x167   : > { %v455_v10 = vrot.slane %v454_v9, 4 }
 0x169   : > { %v456_v11 = vmax.f32 %v454_v9, %v455_v10 }
 0x16b   : > { %v457_v13 = vrot.slane %v456_v11, 2 }
 0x16d   : > { %v458_v14 = vmax.f32 %v456_v11, %v457_v13 }
 0x16f   : > { %v459_v16 = vrot.slane %v458_v14, 1 }
 0x170   : > { %v506_v17 = vpop.xlane.xlu0 %505 }
 0x171   : > { %v460_v18 = vmax.f32 %v458_v14, %v459_v16  ;;  %514 = vst.msk [vmem:[#allocation5] sm:$0x1] %vm468_vm0, %v506_v17 }
 0x173   : > { %469 = vst.msk [vmem:[#allocation4] sm:$0x1] %vm468_vm0, %v460_v18 }
 0x178   : > { %v520_v22 = vld [vmem:[#allocation5] sm:$0x1] }
 0x17a   : > { %v519_v19 = vld [vmem:[#allocation4] sm:$0x1] }
 0x17b   : > { %v521_v23 = vmax.f32 %v519_v19, %v520_v22 }
 0x17d   : > { %v522_v24 = vmax.f32 %v521_v23, 0.0 }
 0x17f   : > { %730 = vrsqrt.f32 %v522_v24  ;;  %vm525_vm1 = vcmp.eq.f32.partialorder %v522_v24, inf  ;;  %v528_v28 = vand.u32 2147483648, %v522_v24  ;;  %vm527_vm2 = vcmp.eq.f32.partialorder %v522_v24, 0.0 }
 0x18c   : > { %v731_v25 = vpop.eup %730 }
 0x18d   : > { %v524_v26 = vmul.f32 %v731_v25, %v522_v24 }
 0x18f   : > { %v526_v29 = vsel %vm525_vm1, %v522_v24, %v524_v26 }
 0x190   : > { %v529_v31 = vsel %vm527_vm2, %v528_v28, %v526_v29 }
 0x191   : > { %532 = vperm.xlu1 %728, %v529_v31  }
 0x20c   : > { %v533_v32 = vpop.permute.xlu1 %532 }
 0x20d   : > { %v538_v33 = vrot.slane %v533_v32, %v255_v15 }
 0x20f   : > { %539 = vst [vmem:[%s186_s6] sm:$0x1] %v538_v33 }
 0x210   : > { %745 = shalt.err (!%p742_p5)
}
 0x211   : > { %s746_s25 = scalar_lea.hbm %s551_s16, 16  ;;  %s750_s28 = scalar_lea.hbm %s986_s2, 32 }
 0x212   : > { %p747_p6 = scmp.ne.s32.totalorder %s551_s16, %s746_s25  ;;  %p751_p10 = scmp.lt.s32.totalorder %s551_s16, %s986_s2 }
 0x213   : > { %p752_p11 = scmp.lt.s32.totalorder %s750_s28, %s746_s25 }
 0x214   : > { %p748_p7 = pnand %p747_p6, %p869_p4 }
 0x215   : > { %p753_p12 = por %p752_p11, %p751_p10 }
 0x216   : > { %p749_p9 = pneg %p748_p7 }
 0x218   : > { %p754_p13 = pnand %p753_p12, %p749_p9 }
 0x21a   : > { %757 = shalt.err (!%p754_p13)
}
 0x21b   : > { %658 = dma.vmem_to_hbm [thread:$0]  (%p869_p4), %s554_s7, 16, %s551_s16, %s541_s18  }
 0x21c PF: > { %p664_p0 = scmp.ge.s32.totalorder %s808_s14, 2  ;;  %s565_s3 = sand.u32 1, %s788_s9  }
 0x21d   : > { %s566_s4 = scalar_lea.sflag [#allocation7], %s565_s3 }
 0x21e   : > { %p661_p1 = pnand %p664_p0, %p876_p8 }
 0x220   : > { %p662_p2 = pneg %p661_p1 }
 0x222   : > { %783 = dma.done.wait (%p662_p2), %s566_s4, 16  }
 0x223   : > { %785 = vsyncadd (%p662_p2), %s566_s4, 4294967280  ;;  %s15_s14 = sadd.s32 1, %s808_s14   ;;  %s989_s9 = smov %s792_s10 }
 0x224   : > { %p12_p3 = scmp.ge.s32.totalorder %s15_s14, 4   ;;  %s990_s10 = smov %s796_s11 }
 0x225   : > { %s991_s11 = smov %s882_s22  ;;  %s992_s12 = smov %s804_s13 }
 0x226   : > { %s993_s13 = smov %s995_s17  ;;  %14 = sbr.rel (!%p12_p3) target bundleno = 4 (0x4), region = 93 }
 0x22b   :  { %570 = vsyncpa [#allocation7], 1 }
 0x22c   :  { %572 = vsyncpa [#allocation7 + $0x1], 1 }

</bundles_post_ra>
